<compile_context>
chip_gen: v5e
topology: v5e:2x2
jax: 0.10.0
libtpu: 0.0.40
codegen_flags: <defaults>
</compile_context>

<pallas_src>
import functools

import jax
import jax.numpy as jnp
from jax.experimental import pallas as pl
from jax.experimental.pallas import tpu as pltpu


_SQRT_2_OVER_PI = 0.7978845608028654
_INV_SQRT_2 = 0.7071067811865476
_MiB = 1024 * 1024


def _act_fn(x, act, *, in_kernel=False):
    """Phi3MLP activation (mirrors ACT2FN / torch gelu), evaluated in f32."""
    if act == "silu":
        if in_kernel:
            # exp already rides the EUP slot; approx reciprocal keeps the
            # divide on the EUP too instead of a VALU Newton sequence.
            return x * pl.reciprocal(1.0 + jnp.exp(-x), approx=True)
        return x * jax.nn.sigmoid(x)
    if act in ("gelu_fast", "gelu_pytorch_tanh", "gelu_new"):
        return 0.5 * x * (1.0 + jnp.tanh(
            _SQRT_2_OVER_PI * (x + 0.044715 * x * x * x)))
    if act == "gelu":
        return 0.5 * x * (1.0 + jax.lax.erf(x * _INV_SQRT_2))
    raise ValueError(f"unsupported hidden_act: {act}")


def interleave_gate_up(w_gate_up, tj):
    """(H, 2I) math layout (gate cols | up cols) -> per-tile interleaved.

    After interleaving, columns [j*2*tj, j*2*tj+tj) hold gate tile j and
    [j*2*tj+tj, (j+1)*2*tj) hold up tile j, so one (H, 2*tj) BlockSpec fetches
    both with a single DMA stream and a single MXU launch per grid step.
    """
    H, I2 = w_gate_up.shape
    I = I2 // 2
    assert I % tj == 0
    n_j = I // tj
    return (w_gate_up.reshape(H, 2, n_j, tj)
            .transpose(0, 2, 1, 3)
            .reshape(H, 2 * I))


def _phi3_mlp_kernel(x_ref, wgu_ref, wd_ref, o_ref, acc_ref, *, act, tj):
    j = pl.program_id(1)

    x = x_ref[...]                                            # (tm, H)
    gu = jnp.dot(x, wgu_ref[...], preferred_element_type=jnp.float32)
    gate = gu[:, :tj]                                         # lane-aligned
    up = gu[:, tj:]
    h = (_act_fn(gate, act, in_kernel=True) * up).astype(wd_ref.dtype)
    partial = jnp.dot(h, wd_ref[...], preferred_element_type=jnp.float32)

    @pl.when(j == 0)
    def _():
        acc_ref[...] = partial            # predicated init (no zero-fill)

    @pl.when(j != 0)
    def _():
        acc_ref[...] += partial

    @pl.when(j == pl.num_programs(1) - 1)
    def _():
        o_ref[...] = acc_ref[...].astype(o_ref.dtype)


def _round_up(a, b):
    return -(-a // b) * b


def _tpu_hints():
    vmem_cap = 128 * _MiB
    try:
        vmem_cap = int(pltpu.get_tpu_info().vmem_capacity_bytes)
    except Exception:
        pass
    kind = ""
    try:
        kind = jax.devices()[0].device_kind.lower()
    except Exception:
        pass
    return vmem_cap, kind


def _weight_spec(shape, index_map, buffer_count):
    if buffer_count > 2:
        try:
            return pl.BlockSpec(shape, index_map,
                                pipeline_mode=pl.Buffered(buffer_count))
        except TypeError:   # jax version without pipeline_mode kwarg
            pass
    return pl.BlockSpec(shape, index_map)


def phi3_mlp(x, w_gate_up, w_down, *, act="silu", tm=None, tj=None,
             vmem_limit_bytes=None, gate_up_interleaved=False):
    """Fused Phi3MLP forward.

    Args:
      x:          (S, H) hidden states.
      w_gate_up:  (H, 2*I) fused gate/up weight (= torch weight.T, gate cols
                  first).  If gate_up_interleaved=True it must already be in
                  interleave_gate_up(..., tj) layout with the same tj.
      w_down:     (I, H) down-projection weight (= torch weight.T).
    Returns:
      (S, H) output in x.dtype.
    """
    S, H = x.shape
    H2, I2 = w_gate_up.shape
    assert H2 == H and I2 % 2 == 0, "w_gate_up must be (H, 2*intermediate)"
    I = I2 // 2
    assert w_down.shape == (I, H), "w_down must be (intermediate, H)"
    assert I % 128 == 0, "intermediate size must be a multiple of 128"

    x_bytes = jnp.dtype(x.dtype).itemsize
    w_bytes = jnp.dtype(w_gate_up.dtype).itemsize
    vmem_cap, kind = _tpu_hints()
    is_v7x = (vmem_cap <= 80 * _MiB) or ("v7" in kind) or ("tpu7" in kind)
    two_cores = is_v7x

    # ---- generation-aware tile defaults ---------------------------------
    # Intensity w.r.t. streamed weights ~= tm flops/byte, so tm must clear the
    # roofline crossover (v5e ~240, v7x ~310, v6e ~650) within VMEM.
    if tm is None:
        if is_v7x:
            tm = 512                                   # 64 MiB VMEM per TC
        elif "v5e" in kind or "v5 lite" in kind or "v5lite" in kind:
            tm = 512
        else:
            tm = 768                                   # v6e-class default
    if tj is None:
        tj = 512                                       # keep DMA runs >= 1 KiB

    # ---- row tiling (sublane-aligned) -----------------------------------
    sub = 16 if x_bytes == 2 else 8
    tm = max(sub, min(tm, _round_up(S, sub)))
    tm = _round_up(tm, sub)
    if two_cores and S > sub and _round_up(S, tm) // tm < 2:
        # v7x has 2 TensorCores: keep >=2 row tiles so both cores are busy.
        tm = _round_up(-(-S // 2), sub)
    pad = (-S) % tm
    Sp = S + pad
    n_rows = Sp // tm

    # ---- intermediate tiling (lane-aligned, divides I, keep >=256) -------
    tj = min(tj, I)
    if I % tj != 0 or tj % 128 != 0:
        for cand in (512, 384, 256):
            if I % cand == 0:
                tj = cand
                break
        else:
            tj = I  # TODO(synk): ragged intermediate tiling; full-I fallback.
    n_j = I // tj

    # Decode / small-tm regime is weight-DMA bound -> 3-deep weight buffers.
    weight_bufs = 3 if (tm <= 256 and n_j >= 3) else 2

    # ---- VMEM budget ------------------------------------------------------
    def working_set(tm_, bufs):
        io_blk = tm_ * H * x_bytes            # x / out blocks (double-buffered)
        acc = tm_ * H * 4
        w_blk = (H * 2 * tj + tj * H) * w_bytes
        return 2 * io_blk + 2 * io_blk + acc + bufs * w_blk

    budget = (vmem_cap * 7) // 8
    while working_set(tm, weight_bufs) + 8 * _MiB > budget and tm > sub:
        tm = max(sub, _round_up(tm // 2, sub))          # safety net
        pad = (-S) % tm
        Sp = S + pad
        n_rows = Sp // tm
    if vmem_limit_bytes is None:
        vmem_limit_bytes = int(min(
            budget, max(working_set(tm, weight_bufs) + 16 * _MiB, 48 * _MiB)))

    if pad:
        x = jnp.pad(x, ((0, pad), (0, 0)))

    if not gate_up_interleaved:
        # One-time layout prep; in production do this offline at weight load.
        w_gate_up = interleave_gate_up(w_gate_up, tj)

    row_spec = pl.BlockSpec((tm, H), lambda i, j: (i, 0))
    wgu_spec = _weight_spec((H, 2 * tj), lambda i, j: (0, j), weight_bufs)
    wd_spec = _weight_spec((tj, H), lambda i, j: (j, 0), weight_bufs)

    grid_spec = pltpu.PrefetchScalarGridSpec(
        num_scalar_prefetch=0,
        grid=(n_rows, n_j),
        in_specs=[row_spec, wgu_spec, wd_spec],
        out_specs=row_spec,
        scratch_shapes=[pltpu.VMEM((tm, H), jnp.float32)],
    )

    weights_total = (w_gate_up.size + w_down.size) * w_bytes
    cost = pl.CostEstimate(
        flops=6 * Sp * H * I,
        transcendentals=Sp * I,
        bytes_accessed=int(weights_total * n_rows + 2 * Sp * H * x_bytes),
    )

    out = pl.pallas_call(
        functools.partial(_phi3_mlp_kernel, act=act, tj=tj),
        out_shape=jax.ShapeDtypeStruct((Sp, H), x.dtype),
        grid_spec=grid_spec,
        compiler_params=pltpu.CompilerParams(
            dimension_semantics=("parallel", "arbitrary"),
            vmem_limit_bytes=int(vmem_limit_bytes),
        ),
        cost_estimate=cost,
    )(x, w_gate_up, w_down)

    if pad:
        out = out[:S]
    return out


def _reference(x, w_gate_up, w_down, act="silu"):
    """Pure-JAX reference mirroring the PyTorch Phi3MLP forward."""
    I = w_gate_up.shape[1] // 2
    gu = jnp.dot(x, w_gate_up, preferred_element_type=jnp.float32)
    gate, up = gu[:, :I], gu[:, I:]
    h = (_act_fn(gate, act) * up).astype(w_down.dtype)
    out = jnp.dot(h, w_down, preferred_element_type=jnp.float32)
    return out.astype(x.dtype)


if __name__ == "__main__":
    key = jax.random.PRNGKey(0)
    k1, k2, k3 = jax.random.split(key, 3)

    # Small, TPU-tile-friendly shapes: seq=8, hidden=128, intermediate=256.
    S, H, I = 8, 128, 256
    dtype = jnp.bfloat16

    x = jax.random.normal(k1, (S, H), dtype=jnp.float32).astype(dtype)
    w_gate_up = (0.05 * jax.random.normal(
        k2, (H, 2 * I), dtype=jnp.float32)).astype(dtype)
    w_down = (0.05 * jax.random.normal(
        k3, (I, H), dtype=jnp.float32)).astype(dtype)

    out = phi3_mlp(x, w_gate_up, w_down, act="silu")
    jax.block_until_ready(out)

    ref = _reference(x, w_gate_up, w_down, act="silu")

    assert out.shape == (S, H), out.shape
    assert out.dtype == dtype, out.dtype
    assert jnp.allclose(out.astype(jnp.float32), ref.astype(jnp.float32),
                        atol=2e-2, rtol=2e-2), "mismatch vs reference"

    print("KERNEL_OK")
</pallas_src>

<mosaic_0001>
module attributes {stable_mosaic.version = 11 : i64} {
  func.func @_phi3_mlp_kernel(%arg0: i32, %arg1: i32, %arg2: memref<16x128xbf16, #tpu.memory_space<vmem>>, %arg3: memref<128x512xbf16, #tpu.memory_space<vmem>>, %arg4: memref<256x128xbf16, #tpu.memory_space<vmem>>, %arg5: memref<16x128xbf16, #tpu.memory_space<vmem>>, %arg6: memref<16x128xf32, #tpu.memory_space<vmem>>) attributes {dimension_semantics = [#tpu.dimension_semantics<parallel>, #tpu.dimension_semantics<arbitrary>], iteration_bounds = array<i64: 1, 1>, scalar_prefetch = 0 : i64, scratch_operands = 1 : i64, tpu.core_type = #tpu.core_type<tc>, window_params = [{transform_indices = @transform_0, window_bounds = array<i64: 16, 128>}, {transform_indices = @transform_1, window_bounds = array<i64: 128, 512>}, {transform_indices = @transform_2, window_bounds = array<i64: 256, 128>}, {transform_indices = @transform_3, window_bounds = array<i64: 16, 128>}]} {
    %c0 = arith.constant 0 : index
    %c0_0 = arith.constant 0 : index
    %0 = vector.load %arg2[%c0, %c0_0] : memref<16x128xbf16, #tpu.memory_space<vmem>>, vector<16x128xbf16>
    %c0_1 = arith.constant 0 : index
    %c0_2 = arith.constant 0 : index
    %1 = vector.load %arg3[%c0_1, %c0_2] : memref<128x512xbf16, #tpu.memory_space<vmem>>, vector<128x512xbf16>
    %cst = arith.constant dense<0.000000e+00> : vector<16x512xf32>
    %2 = tpu.matmul %0, %1, %cst {dimension_numbers = #tpu.dot_dimension_numbers<[1], [0], [0], [1], [0, 0, 1, 1], [], []>} : vector<16x128xbf16>, vector<128x512xbf16>, vector<16x512xf32> -> vector<16x512xf32>
    %3 = vector.extract_strided_slice %2 {offsets = [0, 0], sizes = [16, 256], strides = [1, 1]} : vector<16x512xf32> to vector<16x256xf32>
    %4 = vector.extract_strided_slice %2 {offsets = [0, 256], sizes = [16, 256], strides = [1, 1]} : vector<16x512xf32> to vector<16x256xf32>
    %cst_3 = arith.constant 0.000000e+00 : f32
    %5 = vector.broadcast %cst_3 : f32 to vector<16x256xf32>
    %6 = arith.subf %5, %3 : vector<16x256xf32>
    %7 = math.exp %6 : vector<16x256xf32>
    %cst_4 = arith.constant 1.000000e+00 : f32
    %8 = vector.broadcast %cst_4 : f32 to vector<16x256xf32>
    %9 = arith.addf %8, %7 : vector<16x256xf32>
    %10 = tpu.reciprocal %9 {approx = true} : vector<16x256xf32> -> vector<16x256xf32>
    %11 = arith.mulf %3, %10 : vector<16x256xf32>
    %12 = arith.mulf %11, %4 : vector<16x256xf32>
    %13 = arith.truncf %12 : vector<16x256xf32> to vector<16x256xbf16>
    %c0_5 = arith.constant 0 : index
    %c0_6 = arith.constant 0 : index
    %14 = vector.load %arg4[%c0_5, %c0_6] : memref<256x128xbf16, #tpu.memory_space<vmem>>, vector<256x128xbf16>
    %cst_7 = arith.constant dense<0.000000e+00> : vector<16x128xf32>
    %15 = tpu.matmul %13, %14, %cst_7 {dimension_numbers = #tpu.dot_dimension_numbers<[1], [0], [0], [1], [0, 0, 1, 1], [], []>} : vector<16x256xbf16>, vector<256x128xbf16>, vector<16x128xf32> -> vector<16x128xf32>
    %c0_i32 = arith.constant 0 : i32
    %16 = arith.cmpi eq, %arg1, %c0_i32 : i32
    %17 = arith.extui %16 : i1 to i32
    %c0_i32_8 = arith.constant 0 : i32
    %18 = arith.cmpi ne, %17, %c0_i32_8 : i32
    scf.if %18 {
      %c0_13 = arith.constant 0 : index
      %c0_14 = arith.constant 0 : index
      %25 = vector.load %arg6[%c0_13, %c0_14] : memref<16x128xf32, #tpu.memory_space<vmem>>, vector<16x128xf32>
      tpu.vector_store %arg6[%c0_13, %c0_14], %15 {strides = array<i32>} : memref<16x128xf32, #tpu.memory_space<vmem>>, vector<16x128xf32>,
    } else {
    }
    %c0_i32_9 = arith.constant 0 : i32
    %19 = arith.cmpi ne, %arg1, %c0_i32_9 : i32
    %20 = arith.extui %19 : i1 to i32
    %c0_i32_10 = arith.constant 0 : i32
    %21 = arith.cmpi ne, %20, %c0_i32_10 : i32
    scf.if %21 {
      %c0_13 = arith.constant 0 : index
      %c0_14 = arith.constant 0 : index
      %25 = vector.load %arg6[%c0_13, %c0_14] : memref<16x128xf32, #tpu.memory_space<vmem>>, vector<16x128xf32>
      %26 = arith.addf %25, %15 : vector<16x128xf32>
      %c0_15 = arith.constant 0 : index
      %c0_16 = arith.constant 0 : index
      %27 = vector.load %arg6[%c0_15, %c0_16] : memref<16x128xf32, #tpu.memory_space<vmem>>, vector<16x128xf32>
      tpu.vector_store %arg6[%c0_15, %c0_16], %26 {strides = array<i32>} : memref<16x128xf32, #tpu.memory_space<vmem>>, vector<16x128xf32>,
    } else {
    }
    %c0_i32_11 = arith.constant 0 : i32
    %22 = arith.cmpi eq, %arg1, %c0_i32_11 : i32
    %23 = arith.extui %22 : i1 to i32
    %c0_i32_12 = arith.constant 0 : i32
    %24 = arith.cmpi ne, %23, %c0_i32_12 : i32
    scf.if %24 {
      %c0_13 = arith.constant 0 : index
      %c0_14 = arith.constant 0 : index
      %25 = vector.load %arg6[%c0_13, %c0_14] : memref<16x128xf32, #tpu.memory_space<vmem>>, vector<16x128xf32>
      %26 = arith.truncf %25 : vector<16x128xf32> to vector<16x128xbf16>
      %c0_15 = arith.constant 0 : index
      %c0_16 = arith.constant 0 : index
      %27 = vector.load %arg5[%c0_15, %c0_16] : memref<16x128xbf16, #tpu.memory_space<vmem>>, vector<16x128xbf16>
      tpu.vector_store %arg5[%c0_15, %c0_16], %26 {strides = array<i32>} : memref<16x128xbf16, #tpu.memory_space<vmem>>, vector<16x128xbf16>,
    } else {
    }
    return
  }
  func.func @transform_0(%arg0: i32, %arg1: i32) -> (i32, i32) {
    %c0_i32 = arith.constant 0 : i32
    %c0_i32_0 = arith.constant 0 : i32
    return %arg0, %c0_i32 : i32, i32
  }
  func.func @transform_1(%arg0: i32, %arg1: i32) -> (i32, i32) {
    %c0_i32 = arith.constant 0 : i32
    %c0_i32_0 = arith.constant 0 : i32
    return %c0_i32, %arg1 : i32, i32
  }
  func.func @transform_2(%arg0: i32, %arg1: i32) -> (i32, i32) {
    %c0_i32 = arith.constant 0 : i32
    %c0_i32_0 = arith.constant 0 : i32
    return %arg1, %c0_i32 : i32, i32
  }
  func.func @transform_3(%arg0: i32, %arg1: i32) -> (i32, i32) {
    %c0_i32 = arith.constant 0 : i32
    %c0_i32_0 = arith.constant 0 : i32
    return %arg0, %c0_i32 : i32, i32
  }
}

</mosaic_0001>

<bundles_post_ra>
// kernel: tpu_custom_call.1
= control target key start
LH: loop header
LB: loop body
LE: loop exit
PB: predicated region body
PF: predicated region fallthrough
CT: control target
= control target key end

     0   :  { %8 = vsyncpa [#allocation4], 0  ;;  %s974_s0 = inlined_call_operand.hbm [shape: bf16[16,128], index: 0, kind: input, shape index: {}]   ;;  %s975_s1 = inlined_call_operand.hbm [shape: bf16[128,512], index: 1, kind: input, shape index: {}]   ;;  %s976_s2 = inlined_call_operand.hbm [shape: bf16[256,128], index: 2, kind: input, shape index: {}]   ;;  %s977_s3 = inlined_call_operand.hbm [shape: bf16[16,128], index: 3, kind: output, shape index: {}]  }
   0x1   :  { %9 = vsyncpa [#allocation7], 0  ;;  %s28_s14 = sshll.u32 %s975_s1, 4  ;;  %s29_s14 = int_to_ptr.hbm [resolvable:$true] %s28_s14 }
   0x2   :  { %10 = vsyncpa [#allocation5], 0  ;;  %s925_s15 = smov [#allocation6]   ;;  %s15_s19 = sshll.u32 %s974_s0, 4  ;;  %s16_s19 = int_to_ptr.hbm [resolvable:$true] %s15_s19 }
   0x3   :  { %s30_s16 = sshll.u32 %s925_s15, 4  ;;  %s926_s20 = smov 256   ;;  %s31_s16 = int_to_ptr.vmem [resolvable:$true] %s30_s16 }
   0x4   :  { %s927_s21 = smov 16   ;;  %s928_s22 = smov [#allocation3]  }
   0x5   :  { %36 = dma.hbm_to_vmem [thread:$0]  %s29_s14, 4096, %s31_s16, [#allocation7], %s926_s20, %s926_s20, %s927_s21  }
   0x6   :  { %s17_s23 = sshll.u32 %s928_s22, 4  ;;  %s929_s24 = smov 64   ;;  %s18_s23 = int_to_ptr.vmem [resolvable:$true] %s17_s23 }
   0x7   :  { %s930_s25 = smov 4   ;;  %s41_s27 = sshll.u32 %s976_s2, 4  ;;  %s42_s27 = int_to_ptr.hbm [resolvable:$true] %s41_s27 }
   0x8   :  { %23 = dma.hbm_to_vmem [thread:$0]  %s16_s19, 128, %s18_s23, [#allocation4], %s929_s24, %s929_s24, %s930_s25  }
   0x9   :  { %s931_s28 = smov [#allocation8]  }
   0xa   :  { %s43_s0 = sshll.u32 %s931_s28, 4  ;;  %s44_s0 = int_to_ptr.vmem [resolvable:$true] %s43_s0 }
   0xb   :  { %49 = dma.hbm_to_vmem [thread:$0]  %s42_s27, 2048, %s44_s0, [#allocation7], %s929_s24, %s929_s24, %s930_s25  }
   0xc   :  { %919 = dma.done.wait [#allocation4], 128  }
   0xd   :  { %920 = vsyncadd [#allocation4], 4294967168 }
   0xe   :  { %921 = dma.done.wait [#allocation7], 6144  }
   0xf   :  { %922 = vsyncadd [#allocation7], 4294961152  ;;  %v667_v0 = vld [vmem:[#allocation6 + $0xe0] sm:$0xf]  ;;  %v776_v1 = vld [vmem:[#allocation6 + $0xec] sm:$0xf0] }
  0x10   :  { %v774_v2 = vld [vmem:[#allocation6 + $0xe4] sm:$0xf]  ;;  %v668_v3 = vor.u32 %v776_v1, %v667_v0  ;;  %v669_v4 = vld [vmem:[#allocation6 + $0xf0] sm:$0xf0]  ;;  %v651_v5 = vld [vmem:[#allocation6 + $0xc0] sm:$0xf] }
  0x11   :  { %v772_v6 = vld [vmem:[#allocation6 + $0xcc] sm:$0xf0]  ;;  %v672_v7 = vor.u32 %v774_v2, %v669_v4  ;;  %v770_v8 = vld [vmem:[#allocation6 + $0xc4] sm:$0xf]  ;;  %v653_v9 = vld [vmem:[#allocation6 + $0xd0] sm:$0xf0] }
  0x12   :  { %262 = vmatpush.bf16.msra.mxu0 %v668_v3  ;;  %v652_v10 = vor.u32 %v772_v6, %v651_v5  ;;  %v635_v11 = vld [vmem:[#allocation6 + $0xa0] sm:$0xf]  ;;  %v768_v12 = vld [vmem:[#allocation6 + $0xac] sm:$0xf0]  ;;  %v656_v13 = vor.u32 %v770_v8, %v653_v9  ;;  %v675_v14 = vld [vmem:[#allocation6 + $0xe8] sm:$0xf] }
  0x13   :  { %276 = vmatpush.bf16.msra.mxu1 %v672_v7  ;;  %v777_v15 = vld [vmem:[#allocation6 + $0xf4] sm:$0xf0]  ;;  %v775_v16 = vld [vmem:[#allocation6 + $0xec] sm:$0xf]  ;;  %v766_v17 = vld [vmem:[#allocation6 + $0xa4] sm:$0xf]  ;;  %v636_v23 = vor.u32 %v768_v12, %v635_v11 }
  0x14   :  { %v637_v18 = vld [vmem:[#allocation6 + $0xb0] sm:$0xf0]  ;;  %v676_v19 = vor.u32 %v777_v15, %v675_v14  ;;  %v677_v20 = vld [vmem:[#allocation6 + $0xf8] sm:$0xf0]  ;;  %v659_v22 = vld [vmem:[#allocation6 + $0xc8] sm:$0xf] }
  0x15   :  { %v680_v21 = vor.u32 %v775_v16, %v677_v20  ;;  %v773_v24 = vld [vmem:[#allocation6 + $0xd4] sm:$0xf0]  ;;  %v771_v25 = vld [vmem:[#allocation6 + $0xcc] sm:$0xf]  ;;  %v661_v26 = vld [vmem:[#allocation6 + $0xd8] sm:$0xf0]  ;;  %v640_v27 = vor.u32 %v766_v17, %v637_v18 }
  0x16   :  { %263 = vmatpush.bf16.msra.mxu0 %v652_v10  ;;  %290 = vmatpush.bf16.msra.mxu2 %v676_v19  ;;  %v619_v28 = vld [vmem:[#allocation6 + $0x80] sm:$0xf]  ;;  %v764_v29 = vld [vmem:[#allocation6 + $0x8c] sm:$0xf0]  ;;  %v762_v30 = vld [vmem:[#allocation6 + $0x84] sm:$0xf]  ;;  %v660_v31 = vor.u32 %v773_v24, %v659_v22  ;;  %v664_v32 = vor.u32 %v771_v25, %v661_v26 }
  0x17   :  { %277 = vmatpush.bf16.msra.mxu1 %v656_v13  ;;  %304 = vmatpush.bf16.msra.mxu3 %v680_v21  ;;  %v621_v33 = vld [vmem:[#allocation6 + $0x90] sm:$0xf0]  ;;  %v643_v34 = vld [vmem:[#allocation6 + $0xa8] sm:$0xf]  ;;  %v769_v35 = vld [vmem:[#allocation6 + $0xb4] sm:$0xf0]  ;;  %v620_v38 = vor.u32 %v764_v29, %v619_v28 }
  0x18   :  { %v767_v36 = vld [vmem:[#allocation6 + $0xac] sm:$0xf]  ;;  %v645_v37 = vld [vmem:[#allocation6 + $0xb8] sm:$0xf0]  ;;  %v603_v39 = vld [vmem:[#allocation6 + $0x60] sm:$0xf]  ;;  %v644_v41 = vor.u32 %v769_v35, %v643_v34  ;;  %v624_v42 = vor.u32 %v762_v30, %v621_v33 }
  0x19   :  { %v760_v40 = vld [vmem:[#allocation6 + $0x6c] sm:$0xf0]  ;;  %v758_v43 = vld [vmem:[#allocation6 + $0x64] sm:$0xf]  ;;  %v648_v44 = vor.u32 %v767_v36, %v645_v37  ;;  %v627_v45 = vld [vmem:[#allocation6 + $0x88] sm:$0xf] }
  0x1a   :  { %264 = vmatpush.bf16.msra.mxu0 %v636_v23  ;;  %291 = vmatpush.bf16.msra.mxu2 %v660_v31  ;;  %v765_v46 = vld [vmem:[#allocation6 + $0x94] sm:$0xf0]  ;;  %v605_v47 = vld [vmem:[#allocation6 + $0x70] sm:$0xf0]  ;;  %v763_v48 = vld [vmem:[#allocation6 + $0x8c] sm:$0xf]  ;;  %v604_v50 = vor.u32 %v760_v40, %v603_v39 }
  0x1b   :  { %278 = vmatpush.bf16.msra.mxu1 %v640_v27  ;;  %305 = vmatpush.bf16.msra.mxu3 %v664_v32  ;;  %v629_v49 = vld [vmem:[#allocation6 + $0x98] sm:$0xf0]  ;;  %v587_v51 = vld [vmem:[#allocation6 + $0x40] sm:$0xf]  ;;  %v756_v52 = vld [vmem:[#allocation6 + $0x4c] sm:$0xf0]  ;;  %v628_v53 = vor.u32 %v765_v46, %v627_v45  ;;  %v608_v54 = vor.u32 %v758_v43, %v605_v47 }
  0x1c   :  { %v754_v55 = vld [vmem:[#allocation6 + $0x44] sm:$0xf]  ;;  %v632_v56 = vor.u32 %v763_v48, %v629_v49  ;;  %v611_v57 = vld [vmem:[#allocation6 + $0x68] sm:$0xf]  ;;  %v761_v58 = vld [vmem:[#allocation6 + $0x74] sm:$0xf0]  ;;  %v588_v62 = vor.u32 %v756_v52, %v587_v51 }
  0x1d   :  { %v589_v59 = vld [vmem:[#allocation6 + $0x50] sm:$0xf0]  ;;  %v759_v60 = vld [vmem:[#allocation6 + $0x6c] sm:$0xf]  ;;  %v613_v61 = vld [vmem:[#allocation6 + $0x78] sm:$0xf0]  ;;  %v612_v1 = vor.u32 %v761_v58, %v611_v57 }
  0x1e   :  { %265 = vmatpush.bf16.msra.mxu0 %v620_v38  ;;  %292 = vmatpush.bf16.msra.mxu2 %v644_v41  ;;  %v571_v63 = vld [vmem:[#allocation6 + $0x20] sm:$0xf]  ;;  %v752_v0 = vld [vmem:[#allocation6 + $0x2c] sm:$0xf0]  ;;  %v592_v2 = vor.u32 %v754_v55, %v589_v59  ;;  %v750_v3 = vld [vmem:[#allocation6 + $0x24] sm:$0xf]  ;;  %v616_v4 = vor.u32 %v759_v60, %v613_v61 }
  0x1f   :  { %279 = vmatpush.bf16.msra.mxu1 %v624_v42  ;;  %306 = vmatpush.bf16.msra.mxu3 %v648_v44  ;;  %v595_v5 = vld [vmem:[#allocation6 + $0x48] sm:$0xf]  ;;  %v757_v6 = vld [vmem:[#allocation6 + $0x54] sm:$0xf0]  ;;  %v573_v7 = vld [vmem:[#allocation6 + $0x30] sm:$0xf0]  ;;  %v572_v10 = vor.u32 %v752_v0, %v571_v63 }
  0x20   :  { %v755_v8 = vld [vmem:[#allocation6 + $0x4c] sm:$0xf]  ;;  %v597_v9 = vld [vmem:[#allocation6 + $0x58] sm:$0xf0]  ;;  %v555_v11 = vld [vmem:[#allocation6] sm:$0xf]  ;;  %v596_v13 = vor.u32 %v757_v6, %v595_v5  ;;  %v576_v14 = vor.u32 %v750_v3, %v573_v7 }
  0x21   :  { %v748_v12 = vld [vmem:[#allocation6 + $0xc] sm:$0xf0]  ;;  %v746_v15 = vld [vmem:[#allocation6 + $0x4] sm:$0xf]  ;;  %v600_v16 = vor.u32 %v755_v8, %v597_v9  ;;  %v579_v17 = vld [vmem:[#allocation6 + $0x28] sm:$0xf] }
  0x22   :  { %266 = vmatpush.bf16.msra.mxu0 %v604_v50  ;;  %293 = vmatpush.bf16.msra.mxu2 %v628_v53  ;;  %v753_v18 = vld [vmem:[#allocation6 + $0x34] sm:$0xf0]  ;;  %v557_v19 = vld [vmem:[#allocation6 + $0x10] sm:$0xf0]  ;;  %v751_v20 = vld [vmem:[#allocation6 + $0x2c] sm:$0xf]  ;;  %v556_v22 = vor.u32 %v748_v12, %v555_v11 }
  0x23   :  { %280 = vmatpush.bf16.msra.mxu1 %v608_v54  ;;  %307 = vmatpush.bf16.msra.mxu3 %v632_v56  ;;  %v581_v21 = vld [vmem:[#allocation6 + $0x38] sm:$0xf0]  ;;  %v580_v23 = vor.u32 %v753_v18, %v579_v17  ;;  %v560_v24 = vor.u32 %v746_v15, %v557_v19  ;;  %v563_v26 = vld [vmem:[#allocation6 + $0x8] sm:$0xf]  ;;  %v749_v27 = vld [vmem:[#allocation6 + $0x14] sm:$0xf0] }
  0x24   :  { %v584_v25 = vor.u32 %v751_v20, %v581_v21  ;;  %v747_v28 = vld [vmem:[#allocation6 + $0xc] sm:$0xf]  ;;  %v565_v29 = vld [vmem:[#allocation6 + $0x18] sm:$0xf0]  ;;  %v564_v31 = vor.u32 %v749_v27, %v563_v26  ;;  %v784_v35 = vld [vmem:[#allocation8 + $0x30] sm:$0xff]  ;;  %s932_s2 = smov [#allocation9]  }
  0x25   :  { %v745_v30 = vld [vmem:[#allocation3] sm:$0xff]  ;;  %v568_v32 = vor.u32 %v747_v28, %v565_v29  ;;  %v792_v36 = vld [vmem:[#allocation8 + $0x70] sm:$0xff]  ;;  %v783_v37 = vld [vmem:[#allocation8 + $0x28] sm:$0xff]  ;;  %s533_s29 = sshll.u32 %s932_s2, 4  ;;  %s535_s5 = sshll.u32 %s977_s3, 4  ;;  %s534_s29 = int_to_ptr.vmem [resolvable:$true] %s533_s29  ;;  %s536_s5 = int_to_ptr.hbm [resolvable:$true] %s535_s5 }
  0x26   :  { %267 = vmatpush.bf16.msra.mxu0 %v588_v62  ;;  %294 = vmatpush.bf16.msra.mxu2 %v612_v1  ;;  %v785_v33 = vld [vmem:[#allocation8 + $0x38] sm:$0xff]  ;;  %v791_v38 = vld [vmem:[#allocation8 + $0x68] sm:$0xff]  ;;  %v782_v39 = vld [vmem:[#allocation8 + $0x20] sm:$0xff] }
  0x27   :  { %281 = vmatpush.bf16.msra.mxu1 %v592_v2  ;;  %308 = vmatpush.bf16.msra.mxu3 %v616_v4  ;;  %v793_v34 = vld [vmem:[#allocation8 + $0x78] sm:$0xff]  ;;  %v790_v40 = vld [vmem:[#allocation8 + $0x60] sm:$0xff]  ;;  %v780_v43 = vld [vmem:[#allocation8 + $0x10] sm:$0xff] }
  0x28   :  { %v781_v41 = vld [vmem:[#allocation8 + $0x18] sm:$0xff]  ;;  %v788_v44 = vld [vmem:[#allocation8 + $0x50] sm:$0xff]  ;;  %v779_v45 = vld [vmem:[#allocation8 + $0x8] sm:$0xff] }
  0x29   :  { %v789_v42 = vld [vmem:[#allocation8 + $0x58] sm:$0xff]  ;;  %v787_v46 = vld [vmem:[#allocation8 + $0x48] sm:$0xff]  ;;  %v778_v50 = vld [vmem:[#allocation8] sm:$0xff] }
  0x2a   :  { %268 = vmatpush.bf16.msra.mxu0 %v572_v10  ;;  %295 = vmatpush.bf16.msra.mxu2 %v596_v13  ;;  %v786_v51 = vld [vmem:[#allocation8 + $0x40] sm:$0xff] }
  0x2b   :  { %282 = vmatpush.bf16.msra.mxu1 %v576_v14  ;;  %309 = vmatpush.bf16.msra.mxu3 %v600_v16 }
  0x2e   :  { %269 = vmatpush.bf16.msra.mxu0 %v556_v22  ;;  %296 = vmatpush.bf16.msra.mxu2 %v580_v23 }
  0x2f   :  { %283 = vmatpush.bf16.msra.mxu1 %v560_v24  ;;  %310 = vmatpush.bf16.msra.mxu3 %v584_v25 }
  0x31   :  { %270 = vmatmul.bf16.vlgmr.msra.gmra.mxu0 %v745_v30 }
  0x32   :  { %284 = vmatmul.bf16.vlgmr.msra.gmra.mxu1 %v745_v30  ;;  %297 = vmatpush.bf16.msra.mxu2 %v564_v31 }
  0x33   :  { %311 = vmatpush.bf16.msra.mxu3 %v568_v32  ;;  %476 = vmatpush.bf16.msrb.mxu0 %v785_v33 }
  0x34   :  { %490 = vmatpush.bf16.msrb.mxu1 %v793_v34 }
  0x35   :  { %298 = vmatmul.bf16.vlgmr.msra.gmra.mxu2 %v745_v30 }
  0x36   :  { %312 = vmatmul.bf16.vlgmr.msra.gmra.mxu3 %v745_v30 }
  0x37   :  { %477 = vmatpush.bf16.msrb.mxu0 %v784_v35 }
  0x38   :  { %491 = vmatpush.bf16.msrb.mxu1 %v792_v36 }
  0x3b   :  { %478 = vmatpush.bf16.msrb.mxu0 %v783_v37 }
  0x3c   :  { %492 = vmatpush.bf16.msrb.mxu1 %v791_v38 }
  0x3f   :  { %479 = vmatpush.bf16.msrb.mxu0 %v782_v39 }
  0x40   :  { %493 = vmatpush.bf16.msrb.mxu1 %v790_v40 }
  0x43   :  { %480 = vmatpush.bf16.msrb.mxu0 %v781_v41 }
  0x44   :  { %494 = vmatpush.bf16.msrb.mxu1 %v789_v42 }
  0x47   :  { %481 = vmatpush.bf16.msrb.mxu0 %v780_v43 }
  0x48   :  { %495 = vmatpush.bf16.msrb.mxu1 %v788_v44 }
  0x4b   :  { %482 = vmatpush.bf16.msrb.mxu0 %v779_v45 }
  0x4c   :  { %496 = vmatpush.bf16.msrb.mxu1 %v787_v46 }
  0x4f   :  { %483 = vmatpush.bf16.msrb.mxu0 %v778_v50 }
  0x50   :  { %497 = vmatpush.bf16.msrb.mxu1 %v786_v51 }
  0xae   :  { %v271_v47 = vpop.f32.mrf.mxu0 }
  0xaf   :  { %v318_v48 = vsub.f32 0.0, %v271_v47  ;;  %v285_v49 = vpop.f32.mrf.mxu1 }
  0xb0   :  { %v319_v52 = vsub.f32 0.0, %v285_v49 }
  0xb1   :  { %v322_v53 = vmul.f32 1.442695, %v318_v48 }
  0xb2   :  { %v324_v54 = vmul.f32 1.442695, %v319_v52 }
  0xb3   :  { %807 = vpow2.f32 %v322_v53 }
  0xb4   :  { %809 = vpow2.f32 %v324_v54 }
  0xb6   :  { %v273_v55 = vpop.f32.mrf.mxu0 }
  0xb7   :  { %v320_v56 = vsub.f32 0.0, %v273_v55  ;;  %v287_v57 = vpop.f32.mrf.mxu1 }
  0xb8   :  { %v321_v58 = vsub.f32 0.0, %v287_v57  ;;  %v299_v3 = vpop.f32.mrf.mxu2 }
  0xb9   :  { %v808_v59 = vpop.eup %807  ;;  %v326_v60 = vmul.f32 1.442695, %v320_v56  ;;  %v313_v6 = vpop.f32.mrf.mxu3 }
  0xba   :  { %v328_v61 = vmul.f32 1.442695, %v321_v58  ;;  %v810_v62 = vpop.eup %809  ;;  %v330_v63 = vadd.f32 1.0, %v808_v59 }
  0xbb   :  { %811 = vpow2.f32 %v326_v60  ;;  %v331_v0 = vadd.f32 1.0, %v810_v62 }
  0xbc   :  { %813 = vpow2.f32 %v328_v61 }
  0xbd   :  { %815 = vrcp.f32 %v330_v63 }
  0xbe   :  { %817 = vrcp.f32 %v331_v0 }
  0xc0   :  { %v301_v13 = vpop.f32.mrf.mxu2 }
  0xc1   :  { %v812_v1 = vpop.eup %811  ;;  %v315_v19 = vpop.f32.mrf.mxu3 }
  0xc2   :  { %v332_v2 = vadd.f32 1.0, %v812_v1  ;;  %v814_v4 = vpop.eup %813 }
  0xc3   :  { %v333_v5 = vadd.f32 1.0, %v814_v4  ;;  %v816_v7 = vpop.eup %815 }
  0xc4   :  { %819 = vrcp.f32 %v332_v2  ;;  %v818_v8 = vpop.eup %817  ;;  %v338_v9 = vmul.f32 %v816_v7, %v271_v47 }
  0xc5   :  { %821 = vrcp.f32 %v333_v5  ;;  %v339_v12 = vmul.f32 %v818_v8, %v285_v49 }
  0xc6   :  { %v342_v15 = vmul.f32 %v338_v9, %v299_v3 }
  0xc7   :  { %v343_v20 = vmul.f32 %v339_v12, %v313_v6 }
  0xca   :  { %v820_v10 = vpop.eup %819 }
  0xcb   :  { %v340_v11 = vmul.f32 %v820_v10, %v273_v55  ;;  %v822_v14 = vpop.eup %821 }
  0xcc   :  { %v341_v17 = vmul.f32 %v822_v14, %v287_v57 }
  0xcd   :  { %v344_v16 = vmul.f32 %v340_v11, %v301_v13 }
  0xce   :  { %v345_v21 = vmul.f32 %v341_v17, %v315_v19 }
  0xcf   :  { %v346_v18 = vpack.c.bf16 %v344_v16, %v342_v15 }
  0xd0   :  { %v347_v22 = vpack.c.bf16 %v345_v21, %v343_v20 }
  0xd1   :  { %484 = vmatmul.bf16.vlgmr.msrb.gmra.mxu0 %v346_v18 }
  0xd2   :  { %498 = vmatmul.bf16.vlgmr.msrb.gmra.mxu1 %v347_v22 }
 0x14e   :  { %v485_v23 = vpop.f32.mrf.mxu0 }
 0x14f   :  { %v499_v24 = vpop.f32.mrf.mxu1 }
 0x150   :  { %v500_v27 = vadd.f32 %v499_v24, %v485_v23 }
 0x156   :  { %v487_v25 = vpop.f32.mrf.mxu0 }
 0x157   :  { %v501_v26 = vpop.f32.mrf.mxu1 }
 0x158   :  { %v502_v28 = vadd.f32 %v501_v26, %v487_v25 }
 0x15a   :  { %v797_v29 = vpack.c.bf16 %v502_v28, %v500_v27 }
 0x15c   :  { %798 = vst [vmem:[#allocation9] sm:$0xff] %v797_v29  }
 0x15d   :  { %541 = dma.vmem_to_hbm [thread:$0]  %s534_s29, 128, %s536_s5, [#allocation5], %s929_s24, %s929_s24, %s930_s25  }
 0x15e   :  { %923 = dma.done.wait [#allocation5], 128  }
 0x15f   :  { %924 = vsyncadd [#allocation5], 4294967168 }
 0x160   :  { %546 = vsyncpa [#allocation4], 1 }
 0x161   :  { %547 = vsyncpa [#allocation7], 1 }
 0x162   :  { %548 = vsyncpa [#allocation5], 1 }

</bundles_post_ra>
